<compile_context>
chip_gen: v7x
topology: tpu7x:2x2x1
jax: 0.10.0
libtpu: 0.0.40
codegen_flags: <defaults>
</compile_context>

<pallas_src>
import jax
import jax.numpy as jnp
from jax.experimental import pallas as pl
from jax.experimental.pallas import tpu as pltpu


def _round_up(n, m):
    return ((n + m - 1) // m) * m


def _relu_linear_kernel(x_ref, w_ref, o_ref):
    # x_ref: (R, 256) interleaved activations (even lane = feature 0, odd = feature 1).
    # w_ref: (256, 128) constant expanded weights; its index_map is constant so
    #        Pallas DMAs it into VMEM only once and keeps it resident.
    # o_ref: (R, 128) outputs; its row-major order == the natural (B,) output order.
    z = jnp.maximum(x_ref[...], 0.0)                       # fused ReLU (VPU)
    o_ref[...] = jnp.dot(
        z, w_ref[...],
        preferred_element_type=jnp.float32,
        # Exact-f32 MXU passes. If a v5e profile ever shows the MXU (not HBM) as
        # the binding unit, drop to Precision.HIGH -- accuracy stays ~1e-7.
        precision=jax.lax.Precision.HIGHEST,
    ).astype(o_ref.dtype)


def _pick_row_tile(nr, *, max_rows=4096, min_steps=4):
    """Slab rows (128 batch elements each) handled per grid step.

    - multiple of 8  -> (R, 256) / (R, 128) blocks are (8, 128)-dense
    - <= max_rows    -> <= ~6 MiB HBM traffic, ~12 MiB double-buffered VMEM per step
    - >= min_steps grid steps when possible -> both v7x TensorCores get work
    - balanced across steps -> no tiny ragged tail tile / tail-padding blowup
    """
    steps = max(min_steps, pl.cdiv(nr, max_rows))
    r = _round_up(pl.cdiv(nr, steps), 8)
    r = min(r, max_rows, (nr // 8) * 8)
    return max(r, 8)


def _relu_linear_pallas(x, weight):
    """Pallas path. Requires x: (B, 2) float with B % 128 == 0 and B >= 1024."""
    B = x.shape[0]
    nr = B // 128                       # slab rows of 128 batch elements

    # Free (bitcast) reshape: row-major (B, 2) and (nr, 256) share the same
    # linear order, so no HBM pass is spent on relayout.
    xi = x.reshape(nr, 256)

    # Expanded weights: wbig[2m, m] = w0, wbig[2m+1, m] = w1   -> (256, 128).
    w0 = weight[0, 0]
    w1 = weight[0, 1]
    eye = jnp.eye(128, dtype=x.dtype)
    wbig = jnp.stack([eye * w0, eye * w1], axis=1).reshape(256, 128)

    r = _pick_row_tile(nr)
    grid = pl.cdiv(nr, r)               # ragged last block handled by Pallas

    out = pl.pallas_call(
        _relu_linear_kernel,
        out_shape=jax.ShapeDtypeStruct((nr, 128), x.dtype),
        grid_spec=pl.GridSpec(
            grid=(grid,),
            in_specs=[
                pl.BlockSpec((r, 256), lambda i: (i, 0)),     # activation tiles
                pl.BlockSpec((256, 128), lambda i: (0, 0)),   # constant weights
            ],
            out_specs=pl.BlockSpec((r, 128), lambda i: (i, 0)),
        ),
        compiler_params=pltpu.CompilerParams(
            # Batch tiles are independent: let megacore / both v7x TCs split the
            # grid. (If a v7x profile shows one TC running every step, switch
            # this axis to pltpu.CORE_PARALLEL.)
            dimension_semantics=("parallel",),
            # ~12 MiB of double-buffered blocks + temporaries; raise the scoped
            # VMEM limit explicitly (v5e default is 16 MiB) with headroom while
            # staying under v7x's 64 MiB physical VMEM per TensorCore.
            vmem_limit_bytes=48 * 1024 * 1024,
        ),
    )(xi, wbig)

    # Free (bitcast) reshape back to the PyTorch (B, 1) layout.
    return out.reshape(B, 1)


def neural_network_forward(x, weight, *, min_pallas_batch=16384):
    """x: (B, 2) float32; weight: (1, 2) float32 (PyTorch Linear layout).

    Returns relu(x) @ weight.T with shape (B, 1).
    """
    B = x.shape[0]
    if B < min_pallas_batch or B < 1024 or B % 128 != 0:
        # Small / ragged batches: kernel launch overhead (plus any pad copy)
        # would dominate; this fuses into a single XLA elementwise pass that is
        # already at the HBM roofline, computed exactly in f32.
        # TODO(synk): handle B % 128 != 0 inside the kernel with a masked tail
        # tile instead of falling back, if ragged *large* batches matter.
        xr = jnp.maximum(x, 0.0)
        return xr[:, 0:1] * weight[0, 0] + xr[:, 1:2] * weight[0, 1]
    return _relu_linear_pallas(x, weight)


if __name__ == "__main__":
    key = jax.random.PRNGKey(0)
    kx, kw, kb = jax.random.split(key, 3)

    # Deterministic init mimicking torch.nn.Linear(2, 1, bias=False):
    # uniform(-1/sqrt(in_features), 1/sqrt(in_features)).
    bound = 1.0 / jnp.sqrt(2.0)
    weight = jax.random.uniform(
        kw, (1, 2), dtype=jnp.float32, minval=-bound, maxval=bound
    )

    def ref_fn(x, w):
        xr = jnp.maximum(x, 0.0)
        return xr[:, 0:1] * w[0, 0] + xr[:, 1:2] * w[0, 1]

    # 1) Tiny batch through the public wrapper (small-B fast path).
    x_small = jax.random.normal(kx, (8, 2), dtype=jnp.float32)
    out_small = jax.block_until_ready(neural_network_forward(x_small, weight))
    assert out_small.shape == (8, 1)
    assert jnp.allclose(out_small, ref_fn(x_small, weight), atol=1e-6), \
        "small-batch path mismatch vs reference"

    # 2) Exercise the Pallas kernel directly: B = 1664 -> 13 slab rows,
    #    2 grid steps, with a partial (ragged) last block.
    x_big = jax.random.normal(kb, (1664, 2), dtype=jnp.float32)
    out_big = jax.block_until_ready(jax.jit(_relu_linear_pallas)(x_big, weight))
    assert out_big.shape == (1664, 1)
    assert jnp.allclose(out_big, ref_fn(x_big, weight), atol=1e-5, rtol=1e-5), \
        "pallas path mismatch vs reference"

    print("KERNEL_OK")
</pallas_src>

<mosaic_0001>
module attributes {stable_mosaic.version = 11 : i64} {
  func.func @_relu_linear_kernel(%arg0: i32, %arg1: memref<8x256xf32, #tpu.memory_space<vmem>>, %arg2: memref<256x128xf32, #tpu.memory_space<vmem>>, %arg3: memref<8x128xf32, #tpu.memory_space<vmem>>) attributes {dimension_semantics = [#tpu.dimension_semantics<parallel>], iteration_bounds = array<i64: 2>, scalar_prefetch = 0 : i64, scratch_operands = 0 : i64, tpu.core_type = #tpu.core_type<tc>, window_params = [{transform_indices = @transform_0, window_bounds = array<i64: 8, 256>}, {pipeline_mode = #tpu.pipeline_mode<synchronous>, transform_indices = @transform_1, window_bounds = array<i64: 256, 128>}, {transform_indices = @transform_2, window_bounds = array<i64: 8, 128>}]} {
    %c0 = arith.constant 0 : index
    %c0_0 = arith.constant 0 : index
    %0 = vector.load %arg1[%c0, %c0_0] : memref<8x256xf32, #tpu.memory_space<vmem>>, vector<8x256xf32>
    %cst = arith.constant 0.000000e+00 : f32
    %1 = vector.broadcast %cst : f32 to vector<8x256xf32>
    %2 = arith.maximumf %0, %1 : vector<8x256xf32>
    %c0_1 = arith.constant 0 : index
    %c0_2 = arith.constant 0 : index
    %3 = vector.load %arg2[%c0_1, %c0_2] : memref<256x128xf32, #tpu.memory_space<vmem>>, vector<256x128xf32>
    %cst_3 = arith.constant dense<0.000000e+00> : vector<8x128xf32>
    %4 = tpu.matmul %2, %3, %cst_3 {dimension_numbers = #tpu.dot_dimension_numbers<[1], [0], [0], [1], [0, 0, 1, 1], [], []>, precision = #tpu.contract_precision<fp32>} : vector<8x256xf32>, vector<256x128xf32>, vector<8x128xf32> -> vector<8x128xf32>
    %c0_4 = arith.constant 0 : index
    %c0_5 = arith.constant 0 : index
    %5 = vector.load %arg3[%c0_4, %c0_5] : memref<8x128xf32, #tpu.memory_space<vmem>>, vector<8x128xf32>
    tpu.vector_store %arg3[%c0_4, %c0_5], %4 {strides = array<i32>} : memref<8x128xf32, #tpu.memory_space<vmem>>, vector<8x128xf32>,
    return
  }
  func.func @transform_0(%arg0: i32) -> (i32, i32) {
    %c0_i32 = arith.constant 0 : i32
    %c0_i32_0 = arith.constant 0 : i32
    return %arg0, %c0_i32 : i32, i32
  }
  func.func @transform_1(%arg0: i32) -> (i32, i32) {
    %c0_i32 = arith.constant 0 : i32
    %c0_i32_0 = arith.constant 0 : i32
    %c0_i32_1 = arith.constant 0 : i32
    return %c0_i32, %c0_i32_0 : i32, i32
  }
  func.func @transform_2(%arg0: i32) -> (i32, i32) {
    %c0_i32 = arith.constant 0 : i32
    %c0_i32_0 = arith.constant 0 : i32
    return %arg0, %c0_i32 : i32, i32
  }
}

</mosaic_0001>

<bundles_post_ra>
// kernel: _relu_linear_pallas.1
= control target key start
LH: loop header
LB: loop body
LE: loop exit
PB: predicated region body
PF: predicated region fallthrough
CT: control target
= control target key end

     0   :  { %s1538_s9 = smov 0   ;;  %s2062_s0 = inlined_call_operand.vmem [shape: f32[13,256], index: 0, kind: input, shape index: {}]   ;;  %s2063_s1 = inlined_call_operand.vmem [shape: f32[256,128], index: 1, kind: input, shape index: {}]   ;;  %s2064_s2 = inlined_call_operand.vmem [shape: f32[13,128], index: 2, kind: output, shape index: {}]  }
   0x1 LB: > { %s1094_s10 = sadd.s32 4294967295, %s1521_s9   ;;  %p1098_p0 = scmp.ge.s32.totalorder %s1521_s9, 1  ;;  %s1521_s9 = sphi %s1538_s9, %s12_s9  }
   0x2   : > { %p112_p1 = scmp.lt.s32.totalorder %s1521_s9, 3 }
   0x4   : > { %p113_p2 = pnand %p1098_p0, %p112_p1 }
   0x6   : > { %116 = sbr.rel (%p113_p2) target bundleno = 356 (0x164), region = 28 }
   0xd   : > { %v162_v0 = vld [vmem:[%s2063_s1 + $0x80] sm:$0xff]  ;;  %v163_v1 = vld [vmem:[%s2063_s1 + $0x88] sm:$0xff]  ;;  %v164_v7 = vld [vmem:[%s2063_s1 + $0x90] sm:$0xff]  ;;  %p1738_p3 = scmp.lt.s32.totalorder %s1094_s10, 1 }
   0xe   : > { %v146_v2 = vld [vmem:[%s2063_s1] sm:$0xff]  ;;  %v227_v3 = vand.u32 4294901760, %v162_v0  ;;  %v230_v4 = vand.u32 4294901760, %v163_v1  ;;  %v147_v5 = vld [vmem:[%s2063_s1 + $0x8] sm:$0xff]  ;;  %v165_v8 = vld [vmem:[%s2063_s1 + $0x98] sm:$0xff]  ;;  %v233_v10 = vand.u32 4294901760, %v164_v7 }
   0xf   : > { %v179_v6 = vand.u32 4294901760, %v146_v2  ;;  %v182_v9 = vand.u32 4294901760, %v147_v5  ;;  %v236_v11 = vand.u32 4294901760, %v165_v8  ;;  %v148_v12 = vld [vmem:[%s2063_s1 + $0x10] sm:$0xff]  ;;  %v149_v13 = vld [vmem:[%s2063_s1 + $0x18] sm:$0xff]  ;;  %v166_v18 = vld [vmem:[%s2063_s1 + $0xa0] sm:$0xff] }
  0x10   : > { %v1570_v14 = vpack.c.bf16 %v230_v4, %v227_v3  ;;  %v185_v16 = vand.u32 4294901760, %v148_v12  ;;  %v188_v17 = vand.u32 4294901760, %v149_v13  ;;  %v167_v19 = vld [vmem:[%s2063_s1 + $0xa8] sm:$0xff]  ;;  %v150_v23 = vld [vmem:[%s2063_s1 + $0x20] sm:$0xff]  ;;  %v1593_v25 = vsub.f32 %v164_v7, %v233_v10  ;;  %v168_v37 = vld [vmem:[%s2063_s1 + $0xb0] sm:$0xff]  ;;  %s2153_s10 = smov (!%p1738_p3, %s1094_s10), 1 }
  0x11   : > { %v1572_v15 = vsub.f32 %v146_v2, %v179_v6  ;;  %v1580_v20 = vpack.c.bf16 %v182_v9, %v179_v6  ;;  %v1582_v21 = vsub.f32 %v147_v5, %v182_v9  ;;  %v1584_v22 = vpack.c.bf16 %v236_v11, %v233_v10  ;;  %v151_v24 = vld [vmem:[%s2063_s1 + $0x28] sm:$0xff]  ;;  %v169_v42 = vld [vmem:[%s2063_s1 + $0xb8] sm:$0xff]  ;;  %v152_v55 = vld [vmem:[%s2063_s1 + $0x30] sm:$0xff]  ;;  %s1104_s20 = sshll.u32 %s2153_s10, 4  ;;  %s1101_s28 = sshll.u32 %s2153_s10, 3 }
  0x12   : > { %1316 = vmatprep.subr.bf16.mxu0 %v1570_v14  ;;  %v1595_v26 = vsub.f32 %v165_v8, %v236_v11  ;;  %v1597_v27 = vpack.c.bf16 %v188_v17, %v185_v16  ;;  %v1599_v28 = vsub.f32 %v148_v12, %v185_v16  ;;  %v239_v29 = vand.u32 4294901760, %v166_v18  ;;  %v153_v56 = vld [vmem:[%s2063_s1 + $0x38] sm:$0xff]  ;;  %v170_v5 = vld [vmem:[%s2063_s1 + $0xc0] sm:$0xff]  ;;  %v171_v6 = vld [vmem:[%s2063_s1 + $0xc8] sm:$0xff]  ;;  %s137_s27 = scalar_lea.vmem %s2062_s0, %s1104_s20  ;;  %s141_s3 = scalar_lea.vmem %s2064_s2, %s1101_s28 }
  0x13   : > { %1318 = vmatpush3.bf16.msra.mxu0 %v1580_v20  ;;  %v242_v30 = vand.u32 4294901760, %v167_v19  ;;  %v1602_v31 = vsub.f32 %v162_v0, %v227_v3  ;;  %v1604_v32 = vsub.f32 %v163_v1, %v230_v4  ;;  %v191_v33 = vand.u32 4294901760, %v150_v23  ;;  %v154_v11 = vld [vmem:[%s2063_s1 + $0x40] sm:$0xff] }
  0x14   : > { %1320 = vmatprep.subr.bf16.mxu0 %v1584_v22  ;;  %v194_v34 = vand.u32 4294901760, %v151_v24  ;;  %v2082_v35 = vand.u32 4294901760, %v1572_v15  ;;  %v2081_v36 = vand.u32 4294901760, %v1582_v21  ;;  %v1612_v38 = vsub.f32 %v149_v13, %v188_v17 }
  0x15   : > { %v1614_v39 = vpack.c.bf16 %v242_v30, %v239_v29  ;;  %v1616_v40 = vsub.f32 %v166_v18, %v239_v29  ;;  %v2084_v41 = vand.u32 4294901760, %v1602_v31  ;;  %v1622_v43 = vsub.f32 %v167_v19, %v242_v30  ;;  %v155_v29 = vld [vmem:[%s2063_s1 + $0x48] sm:$0xff] }
  0x16   : > { %v2083_v44 = vand.u32 4294901760, %v1604_v32  ;;  %v1625_v45 = vpack.c.bf16 %v194_v34, %v191_v33  ;;  %v1627_v46 = vsub.f32 %v150_v23, %v191_v33  ;;  %v294_v48 = vsub.f32 %v1572_v15, %v2082_v35 }
  0x17   : > { %1322 = vmatpush3.bf16.msra.mxu0 %v1597_v27  ;;  %v406_v47 = vsub.f32 %v1602_v31, %v2084_v41  ;;  %v301_v49 = vsub.f32 %v1582_v21, %v2081_v36  ;;  %v245_v50 = vand.u32 4294901760, %v168_v37  ;;  %v248_v52 = vand.u32 4294901760, %v169_v42  ;;  %v142_v41 = vld [vmem:[%s137_s27] sm:$0xff] }
  0x18   : > { %1324 = vmatprep.subr.bf16.mxu0 %v1614_v39  ;;  %v413_v51 = vsub.f32 %v1604_v32, %v2083_v44  ;;  %v2080_v53 = vand.u32 4294901760, %v1593_v25  ;;  %v2077_v54 = vand.u32 4294901760, %v1595_v26  ;;  %v1651_v58 = vsub.f32 %v151_v24, %v194_v34 }
  0x19   : > { %v407_v57 = vand.u32 4294901760, %v406_v47  ;;  %v295_v59 = vand.u32 4294901760, %v294_v48  ;;  %v302_v60 = vand.u32 4294901760, %v301_v49  ;;  %v1653_v62 = vpack.c.bf16 %v248_v52, %v245_v50 }
  0x1a   : > { %v414_v61 = vand.u32 4294901760, %v413_v51  ;;  %v1655_v63 = vsub.f32 %v168_v37, %v245_v50  ;;  %v420_v0 = vsub.f32 %v1593_v25, %v2080_v53  ;;  %v427_v2 = vsub.f32 %v1595_v26, %v2077_v54 }
  0x1b   : > { %1326 = vmatpush3.bf16.msra.mxu0 %v1625_v45  ;;  %v1349_v1 = vpack.c.bf16 %v302_v60, %v295_v59  ;;  %v197_v3 = vand.u32 4294901760, %v152_v55  ;;  %v200_v4 = vand.u32 4294901760, %v153_v56  ;;  %v2076_v9 = vand.u32 4294901760, %v1599_v28 }
  0x1c   : > { %v1347_v7 = vpack.c.bf16 %v414_v61, %v407_v57  ;;  %1328 = vmatprep.subr.bf16.mxu0 %v1653_v62  ;;  %v421_v8 = vand.u32 4294901760, %v420_v0  ;;  %v2073_v10 = vand.u32 4294901760, %v1612_v38  ;;  %v1676_v12 = vsub.f32 %v169_v42, %v248_v52  ;;  %v173_v57 = vld [vmem:[%s2063_s1 + $0xd8] sm:$0xff] }
  0x1d   : > { %v428_v13 = vand.u32 4294901760, %v427_v2  ;;  %v1678_v16 = vpack.c.bf16 %v200_v4, %v197_v3  ;;  %v1680_v17 = vsub.f32 %v152_v55, %v197_v3  ;;  %v308_v18 = vsub.f32 %v1599_v28, %v2076_v9 }
  0x1e   : > { %1348 = vmatprep.subr.bf16.mxu1 %v1347_v7  ;;  %v315_v19 = vsub.f32 %v1612_v38, %v2073_v10  ;;  %v251_v23 = vand.u32 4294901760, %v170_v5  ;;  %v254_v24 = vand.u32 4294901760, %v171_v6  ;;  %v2072_v33 = vand.u32 4294901760, %v1616_v40 }
  0x1f   : > { %1350 = vmatpush3.bf16.msra.mxu1 %v1349_v1  ;;  %v1351_v30 = vpack.c.bf16 %v428_v13, %v421_v8  ;;  %1330 = vmatpush3.bf16.msra.mxu0 %v1678_v16  ;;  %v2070_v34 = vand.u32 4294901760, %v1622_v43  ;;  %v203_v37 = vand.u32 4294901760, %v154_v11  ;;  %v1694_v42 = vsub.f32 %v153_v56, %v200_v4  ;;  %v172_v56 = vld [vmem:[%s2063_s1 + $0xd0] sm:$0xff] }
  0x20   : > { %v309_v47 = vand.u32 4294901760, %v308_v18  ;;  %v316_v48 = vand.u32 4294901760, %v315_v19  ;;  %v1696_v49 = vpack.c.bf16 %v254_v24, %v251_v23  ;;  %v1698_v50 = vsub.f32 %v170_v5, %v251_v23  ;;  %v156_v1 = vld [vmem:[%s2063_s1 + $0x50] sm:$0xff]  ;;  %v157_v18 = vld [vmem:[%s2063_s1 + $0x58] sm:$0xff] }
  0x21   : > { %1352 = vmatprep.subr.bf16.mxu1 %v1351_v30  ;;  %v434_v51 = vsub.f32 %v1616_v40, %v2072_v33  ;;  %v441_v52 = vsub.f32 %v1622_v43, %v2070_v34  ;;  %v206_v55 = vand.u32 4294901760, %v155_v29  ;;  %v1713_v60 = vsub.f32 %v171_v6, %v254_v24 }
  0x22   : > { %v1353_v59 = vpack.c.bf16 %v316_v48, %v309_v47  ;;  %1332 = vmatprep.subr.bf16.mxu0 %v1696_v49  ;;  %v2069_v61 = vand.u32 4294901760, %v1627_v46  ;;  %v2067_v0 = vand.u32 4294901760, %v1651_v58  ;;  %v1722_v5 = vsub.f32 %v154_v11, %v203_v37 }
  0x23   : > { %v435_v2 = vand.u32 4294901760, %v434_v51  ;;  %v442_v3 = vand.u32 4294901760, %v441_v52  ;;  %v1720_v4 = vpack.c.bf16 %v206_v55, %v203_v37  ;;  %v257_v8 = vand.u32 4294901760, %v172_v56 }
  0x24   : > { %1354 = vmatpush3.bf16.msra.mxu1 %v1353_v59  ;;  %v322_v6 = vsub.f32 %v1627_v46, %v2069_v61  ;;  %v329_v7 = vsub.f32 %v1651_v58, %v2067_v0  ;;  %v260_v13 = vand.u32 4294901760, %v173_v57  ;;  %v2066_v11 = vand.u32 4294901760, %v1655_v63 }
  0x25   : > { %v1355_v19 = vpack.c.bf16 %v442_v3, %v435_v2  ;;  %1334 = vmatpush3.bf16.msra.mxu0 %v1720_v4  ;;  %v2065_v23 = vand.u32 4294901760, %v1676_v12  ;;  %v209_v24 = vand.u32 4294901760, %v156_v1  ;;  %v1742_v30 = vsub.f32 %v155_v29, %v206_v55  ;;  %v174_v29 = vld [vmem:[%s2063_s1 + $0xe0] sm:$0xff]  ;;  %v175_v55 = vld [vmem:[%s2063_s1 + $0xe8] sm:$0xff] }
  0x26   : > { %v323_v37 = vand.u32 4294901760, %v322_v6  ;;  %v330_v47 = vand.u32 4294901760, %v329_v7  ;;  %v1744_v48 = vpack.c.bf16 %v260_v13, %v257_v8  ;;  %v1746_v51 = vsub.f32 %v172_v56, %v257_v8  ;;  %v158_v8 = vld [vmem:[%s2063_s1 + $0x60] sm:$0xff] }
  0x27   : > { %1356 = vmatprep.subr.bf16.mxu1 %v1355_v19  ;;  %v448_v52 = vsub.f32 %v1655_v63, %v2066_v11  ;;  %v455_v59 = vsub.f32 %v1676_v12, %v2065_v23  ;;  %v212_v2 = vand.u32 4294901760, %v157_v18  ;;  %v1761_v3 = vsub.f32 %v173_v57, %v260_v13 }
  0x28   : > { %v1357_v56 = vpack.c.bf16 %v330_v47, %v323_v37  ;;  %1336 = vmatprep.subr.bf16.mxu0 %v1744_v48  ;;  %v2068_v6 = vand.u32 4294901760, %v1680_v17  ;;  %v2071_v7 = vand.u32 4294901760, %v1694_v42  ;;  %v1770_v0 = vsub.f32 %v156_v1, %v209_v24  ;;  %v159_v1 = vld [vmem:[%s2063_s1 + $0x68] sm:$0xff] }
  0x29   : > { %v449_v19 = vand.u32 4294901760, %v448_v52  ;;  %v456_v23 = vand.u32 4294901760, %v455_v59  ;;  %v1768_v11 = vpack.c.bf16 %v212_v2, %v209_v24  ;;  %v263_v37 = vand.u32 4294901760, %v174_v29 }
  0x2a   : > { %1358 = vmatpush3.bf16.msra.mxu1 %v1357_v56  ;;  %v336_v57 = vsub.f32 %v1680_v17, %v2068_v6  ;;  %v343_v13 = vsub.f32 %v1694_v42, %v2071_v7  ;;  %v266_v47 = vand.u32 4294901760, %v175_v55  ;;  %v2075_v52 = vand.u32 4294901760, %v1698_v50 }
  0x2b   : > { %v1359_v24 = vpack.c.bf16 %v456_v23, %v449_v19  ;;  %1338 = vmatpush3.bf16.msra.mxu0 %v1768_v11  ;;  %v2074_v59 = vand.u32 4294901760, %v1713_v60  ;;  %v215_v56 = vand.u32 4294901760, %v158_v8  ;;  %v1790_v6 = vsub.f32 %v157_v18, %v212_v2  ;;  %v176_v18 = vld [vmem:[%s2063_s1 + $0xf0] sm:$0xff]  ;;  %v177_v2 = vld [vmem:[%s2063_s1 + $0xf8] sm:$0xff] }
  0x2c   : > { %v337_v61 = vand.u32 4294901760, %v336_v57  ;;  %v344_v34 = vand.u32 4294901760, %v343_v13  ;;  %v1792_v7 = vpack.c.bf16 %v266_v47, %v263_v37  ;;  %v1794_v33 = vsub.f32 %v174_v29, %v263_v37 }
  0x2d   : > { %1360 = vmatprep.subr.bf16.mxu1 %v1359_v24  ;;  %v462_v23 = vsub.f32 %v1698_v50, %v2075_v52  ;;  %v469_v19 = vsub.f32 %v1713_v60, %v2074_v59  ;;  %v218_v10 = vand.u32 4294901760, %v159_v1  ;;  %v1810_v57 = vsub.f32 %v175_v55, %v266_v47  ;;  %v160_v24 = vld [vmem:[%s2063_s1 + $0x70] sm:$0xff] }
  0x2e   : > { %2109 = vst [vmem:[#allocation2_spill] sm:$0xff] %v1792_v7  ;;  %v1361_v29 = vpack.c.bf16 %v344_v34, %v337_v61  ;;  %1340 = vmatprep.subr.bf16.mxu0 %v1792_v7  ;;  %v2078_v13 = vand.u32 4294901760, %v1722_v5  ;;  %v2079_v37 = vand.u32 4294901760, %v1742_v30  ;;  %v1819_v54 = vsub.f32 %v158_v8, %v215_v56 }
  0x2f   : > { %v463_v59 = vand.u32 4294901760, %v462_v23  ;;  %v470_v52 = vand.u32 4294901760, %v469_v19  ;;  %v1817_v9 = vpack.c.bf16 %v218_v10, %v215_v56  ;;  %v269_v55 = vand.u32 4294901760, %v176_v18  ;;  %v161_v23 = vld [vmem:[%s2063_s1 + $0x78] sm:$0xff] }
  0x30   : > { %1362 = vmatpush3.bf16.msra.mxu1 %v1361_v29  ;;  %v350_v34 = vsub.f32 %v1722_v5, %v2078_v13  ;;  %v357_v61 = vsub.f32 %v1742_v30, %v2079_v37  ;;  %v272_v47 = vand.u32 4294901760, %v177_v2  ;;  %v2087_v56 = vand.u32 4294901760, %v1746_v51 }
  0x31   : > { %2110 = vst [vmem:[#allocation3_spill] sm:$0xff] %v1817_v9  ;;  %v1363_v8 = vpack.c.bf16 %v470_v52, %v463_v59  ;;  %1342 = vmatpush3.bf16.msra.mxu0 %v1817_v9  ;;  %v2088_v19 = vand.u32 4294901760, %v1761_v3  ;;  %v221_v29 = vand.u32 4294901760, %v160_v24  ;;  %v1836_v13 = vsub.f32 %v159_v1, %v218_v10  ;;  %v143_v9 = vld [vmem:[%s137_s27 + $0x8] sm:$0xff] }
  0x32   : > { %v351_v37 = vand.u32 4294901760, %v350_v34  ;;  %v358_v53 = vand.u32 4294901760, %v357_v61  ;;  %v1838_v36 = vpack.c.bf16 %v272_v47, %v269_v55  ;;  %v1840_v35 = vsub.f32 %v176_v18, %v269_v55 }
  0x33   : > { %1364 = vmatprep.subr.bf16.mxu1 %v1363_v8  ;;  %v476_v52 = vsub.f32 %v1746_v51, %v2087_v56  ;;  %v483_v59 = vsub.f32 %v1761_v3, %v2088_v19  ;;  %v224_v44 = vand.u32 4294901760, %v161_v23  ;;  %v1849_v1 = vsub.f32 %v177_v2, %v272_v47 }
  0x34   : > { %2111 = vst [vmem:[#allocation4_spill] sm:$0xff] %v1838_v36  ;;  %v1365_v10 = vpack.c.bf16 %v358_v53, %v351_v37  ;;  %1344 = vmatprep.subr.bf16.mxu0 %v1838_v36  ;;  %v2091_v34 = vand.u32 4294901760, %v1770_v0  ;;  %v2092_v18 = vand.u32 4294901760, %v1790_v6  ;;  %v1855_v56 = vsub.f32 %v160_v24, %v221_v29 }
  0x35   : > { %v477_v61 = vand.u32 4294901760, %v476_v52  ;;  %v484_v55 = vand.u32 4294901760, %v483_v59  ;;  %v1853_v8 = vpack.c.bf16 %v224_v44, %v221_v29  ;;  %v144_v2 = vmax.f32 %v142_v41, 0.0 }
  0x36   : > { %1366 = vmatpush3.bf16.msra.mxu1 %v1365_v10  ;;  %v364_v19 = vsub.f32 %v1770_v0, %v2091_v34  ;;  %v371_v53 = vsub.f32 %v1790_v6, %v2092_v18  ;;  %v145_v37 = vmax.f32 %v143_v9, 0.0  ;;  %v2093_v52 = vand.u32 4294901760, %v1794_v33 }
  0x37   : > { %2112 = vst [vmem:[#allocation5_spill] sm:$0xff] %v1853_v8  ;;  %v1367_v47 = vpack.c.bf16 %v484_v55, %v477_v61  ;;  %1346 = vmatpush3.bf16.msra.mxu0 %v1853_v8  ;;  %v2096_v59 = vand.u32 4294901760, %v1810_v57  ;;  %v1379_v24 = vpack.c.bf16 %v1604_v32, %v1602_v31  ;;  %v1870_v34 = vand.u32 4294901760, %v144_v2 }
  0x38   : > { %v365_v29 = vand.u32 4294901760, %v364_v19  ;;  %v372_v10 = vand.u32 4294901760, %v371_v53  ;;  %v1868_v36 = vand.u32 4294901760, %v145_v37  ;;  %v490_v41 = vsub.f32 %v1794_v33, %v2093_v52 }
  0x39   : > { %1368 = vmatprep.subr.bf16.mxu1 %v1367_v47  ;;  %v497_v9 = vsub.f32 %v1810_v57, %v2096_v59  ;;  %1380 = vmatprep.subr.bf16.mxu0 %v1379_v24  ;;  %v2097_v61 = vand.u32 4294901760, %v1819_v54  ;;  %v2098_v55 = vand.u32 4294901760, %v1836_v13  ;;  %v1880_v19 = vsub.f32 %v161_v23, %v224_v44 }
  0x3a   : > { %2113 = vst [vmem:[#allocation6_spill] sm:$0xff] %v1868_v36  ;;  %v1369_v53 = vpack.c.bf16 %v372_v10, %v365_v29  ;;  %v1883_v18 = vsub.f32 %v145_v37, %v1868_v36  ;;  %v1886_v47 = vsub.f32 %v144_v2, %v1870_v34  ;;  %515 = vmatprep.mubr.f32.mxu1 %v1868_v36  ;;  %v491_v52 = vand.u32 4294901760, %v490_v41 }
  0x3b   : > { %v498_v8 = vand.u32 4294901760, %v497_v9  ;;  %v378_v24 = vsub.f32 %v1819_v54, %v2097_v61  ;;  %v385_v44 = vsub.f32 %v1836_v13, %v2098_v55  ;;  %v2106_v2 = vand.u32 4294901760, %v1840_v35 }
  0x3c   : > { %2114 = vst [vmem:[#allocation7_spill] sm:$0xff] %v1886_v47  ;;  %1370 = vmatpush3.bf16.msra.mxu1 %v1369_v53  ;;  %v276_v23 = vand.u32 4294901760, %v1883_v18  ;;  %v2103_v37 = vand.u32 4294901760, %v1886_v47  ;;  %v2107_v29 = vand.u32 4294901760, %v1849_v1 }
  0x3d   : > { %v1371_v10 = vpack.c.bf16 %v498_v8, %v491_v52  ;;  %v379_v41 = vand.u32 4294901760, %v378_v24  ;;  %v386_v9 = vand.u32 4294901760, %v385_v44  ;;  %v504_v53 = vsub.f32 %v1840_v35, %v2106_v2 }
  0x3e   : > { %v277_v59 = vsub.f32 %v1883_v18, %v276_v23  ;;  %v283_v61 = vsub.f32 %v1886_v47, %v2103_v37  ;;  %v511_v55 = vsub.f32 %v1849_v1, %v2107_v29  ;;  %v1381_v8 = vpack.c.bf16 %v1582_v21, %v1572_v15 }
  0x3f   : > { %1372 = vmatprep.subr.bf16.mxu1 %v1371_v10  ;;  %v1373_v36 = vpack.c.bf16 %v386_v9, %v379_v41  ;;  %v391_v52 = vand.u32 4294901760, %v1855_v56  ;;  %v398_v24 = vand.u32 4294901760, %v1880_v19  ;;  %v505_v37 = vand.u32 4294901760, %v504_v53 }
  0x40   : > { %v278_v44 = vand.u32 4294901760, %v277_v59  ;;  %v284_v7 = vand.u32 4294901760, %v283_v61  ;;  %v512_v47 = vand.u32 4294901760, %v511_v55  ;;  %v1383_v2 = vpack.c.bf16 %v1595_v26, %v1593_v25 }
  0x41   : > { %1374 = vmatpush3.bf16.msra.mxu1 %v1373_v36  ;;  %v392_v10 = vsub.f32 %v1855_v56, %v391_v52  ;;  %v399_v41 = vsub.f32 %v1880_v19, %v398_v24  ;;  %v1385_v36 = vpack.c.bf16 %v1612_v38, %v1599_v28  ;;  %v1387_v55 = vpack.c.bf16 %v1622_v43, %v1616_v40 }
  0x42   : > { %279 = vmatprep.mubr.f32.mxu0 %v278_v44  ;;  %v1375_v9 = vpack.c.bf16 %v512_v47, %v505_v37  ;;  %v1389_v53 = vpack.c.bf16 %v1651_v58, %v1627_v46  ;;  %v2115_v47 = vand.u32 4294901760, %v1602_v31  ;;  %v2118_v44 = vand.u32 4294901760, %v1582_v21 }
  0x43   : > { %285 = vmatmul.mubr.f32.vlgmr.msra.gmra.mrb[0].mxu0 %v284_v7  ;;  %v393_v29 = vand.u32 4294901760, %v392_v10  ;;  %v400_v59 = vand.u32 4294901760, %v399_v41  ;;  %v2116_v7 = vand.u32 4294901760, %v1604_v32  ;;  %v2123_v31 = vand.u32 4294901760, %v1616_v40 }
  0x44   : > { %1382 = vmatpush3.bf16.msra.mxu0 %v1381_v8  ;;  %1376 = vmatprep.subr.bf16.mxu1 %v1375_v9  ;;  %v2117_v8 = vand.u32 4294901760, %v1572_v15  ;;  %v2121_v9 = vand.u32 4294901760, %v1599_v28  ;;  %v2124_v32 = vand.u32 4294901760, %v1622_v43  ;;  %v2125_v15 = vand.u32 4294901760, %v1627_v46 }
  0x45   : > { %1384 = vmatprep.subr.bf16.mxu0 %v1383_v2  ;;  %v1377_v61 = vpack.c.bf16 %v400_v59, %v393_v29  ;;  %652 = vmatprep.mubr.f32.mxu0 %v1883_v18  ;;  %v1443_v37 = vpack.c.bf16 %v2116_v7, %v2115_v47  ;;  %v2119_v2 = vand.u32 4294901760, %v1593_v25  ;;  %v2120_v29 = vand.u32 4294901760, %v1595_v26 }
  0x46   : > { %v1445_v10 = vpack.c.bf16 %v2118_v44, %v2117_v8  ;;  %v2122_v59 = vand.u32 4294901760, %v1612_v38  ;;  %v1451_v47 = vpack.c.bf16 %v2124_v32, %v2123_v31  ;;  %v2126_v21 = vand.u32 4294901760, %v1651_v58 }
  0x47   : > { %v1447_v41 = vpack.c.bf16 %v2120_v29, %v2119_v2  ;;  %1378 = vmatpush3.bf16.msra.mxu1 %v1377_v61  ;;  %v2127_v25 = vand.u32 4294901760, %v1655_v63  ;;  %v2128_v26 = vand.u32 4294901760, %v1676_v12  ;;  %v2129_v28 = vand.u32 4294901760, %v1680_v17 }
  0x48   : > { %v1449_v18 = vpack.c.bf16 %v2122_v59, %v2121_v9  ;;  %v1453_v7 = vpack.c.bf16 %v2126_v21, %v2125_v15  ;;  %v2130_v38 = vand.u32 4294901760, %v1694_v42  ;;  %1386 = vmatpush3.bf16.msra.mxu0 %v1385_v36  ;;  %1412 = vmatprep.subr.bf16.mxu1 %v1570_v14  ;;  %v2131_v40 = vand.u32 4294901760, %v1698_v50 }
  0x49   : > { %v1455_v8 = vpack.c.bf16 %v2128_v26, %v2127_v25  ;;  %v2132_v43 = vand.u32 4294901760, %v1713_v60  ;;  %v2133_v58 = vand.u32 4294901760, %v1722_v5  ;;  %v2134_v44 = vand.u32 4294901760, %v1742_v30  ;;  %1388 = vmatprep.subr.bf16.mxu0 %v1387_v55 }
  0x4a   : > { %v1457_v61 = vpack.c.bf16 %v2130_v38, %v2129_v28  ;;  %v2135_v29 = vand.u32 4294901760, %v1746_v51  ;;  %v2136_v9 = vand.u32 4294901760, %v1761_v3  ;;  %v1391_v36 = vpack.c.bf16 %v1676_v12, %v1655_v63  ;;  %517 = vmatmul.mubr.f32.vlgmr.msra.gmra.mrb[0].mxu1 %v1870_v34 }
  0x4b   : > { %v1459_v46 = vpack.c.bf16 %v2132_v43, %v2131_v40  ;;  %v1461_v2 = vpack.c.bf16 %v2134_v44, %v2133_v58  ;;  %v2137_v31 = vand.u32 4294901760, %v1770_v0  ;;  %v2138_v32 = vand.u32 4294901760, %v1790_v6  ;;  %1414 = vmatpush3.bf16.msra.mxu1 %v1580_v20  ;;  %759 = vmatprep.mubr.f32.mxu1 %v276_v23 }
  0x4c   : > { %v1463_v59 = vpack.c.bf16 %v2136_v9, %v2135_v29  ;;  %v2139_v21 = vand.u32 4294901760, %v1819_v54  ;;  %v2140_v25 = vand.u32 4294901760, %v1836_v13  ;;  %1390 = vmatpush3.bf16.msra.mxu0 %v1389_v53  ;;  %1416 = vmatprep.subr.bf16.mxu1 %v1584_v22  ;;  %v1393_v63 = vpack.c.bf16 %v1694_v42, %v1680_v17 }
  0x4d   : > { %v1465_v15 = vpack.c.bf16 %v2138_v32, %v2137_v31  ;;  %1392 = vmatprep.subr.bf16.mxu0 %v1391_v36  ;;  %v1395_v12 = vpack.c.bf16 %v1713_v60, %v1698_v50  ;;  %v1397_v55 = vpack.c.bf16 %v1742_v30, %v1722_v5  ;;  %v1399_v23 = vpack.c.bf16 %v1761_v3, %v1746_v51  ;;  %v2141_v5 = vld [vmem:[#allocation2_spill] sm:$0xff]  ;;  %v2143_v30 = vld [vmem:[#allocation3_spill] sm:$0xff]  ;;  %v2144_v51 = vld [vmem:[#allocation4_spill] sm:$0xff] }
  0x4e   : > { %v1983_v26 = vpack.c.bf16 %v2140_v25, %v2139_v21  ;;  %v1401_v17 = vpack.c.bf16 %v1790_v6, %v1770_v0  ;;  %v1403_v42 = vpack.c.bf16 %v1810_v57, %v1794_v33  ;;  %v1405_v50 = vpack.c.bf16 %v1836_v13, %v1819_v54  ;;  %v2142_v54 = vld [vmem:[#allocation7_spill] sm:$0xff]  ;;  %v2145_v3 = vld [vmem:[#allocation6_spill] sm:$0xff]  ;;  %v2146_v6 = vld [vmem:[#allocation5_spill] sm:$0xff] }
  0x4f   : > { %1418 = vmatpush3.bf16.msra.mxu1 %v1597_v27  ;;  %v1407_v60 = vpack.c.bf16 %v1849_v1, %v1840_v35  ;;  %v1409_v0 = vpack.c.bf16 %v1880_v19, %v1855_v56  ;;  %v2147_v13 = vand.u32 4294901760, %v2142_v54 }
  0x50   : > { %1394 = vmatpush3.bf16.msra.mxu0 %v1393_v63  ;;  %1420 = vmatprep.subr.bf16.mxu1 %v1614_v39 }
  0x51   : > { %1396 = vmatprep.subr.bf16.mxu0 %v1395_v12 }
  0x53   : > { %1422 = vmatpush3.bf16.msra.mxu1 %v1625_v45 }
  0x54   : > { %1398 = vmatpush3.bf16.msra.mxu0 %v1397_v55  ;;  %1424 = vmatprep.subr.bf16.mxu1 %v1653_v62 }
  0x55   : > { %1400 = vmatprep.subr.bf16.mxu0 %v1399_v23 }
  0x57   : > { %1426 = vmatpush3.bf16.msra.mxu1 %v1678_v16 }
  0x58   : > { %1402 = vmatpush3.bf16.msra.mxu0 %v1401_v17  ;;  %1428 = vmatprep.subr.bf16.mxu1 %v1696_v49 }
  0x59   : > { %1404 = vmatprep.subr.bf16.mxu0 %v1403_v42 }
  0x5b   : > { %1430 = vmatpush3.bf16.msra.mxu1 %v1720_v4 }
  0x5c   : > { %1406 = vmatpush3.bf16.msra.mxu0 %v1405_v50  ;;  %1432 = vmatprep.subr.bf16.mxu1 %v1744_v48 }
  0x5d   : > { %1408 = vmatprep.subr.bf16.mxu0 %v1407_v60 }
  0x5f   : > { %1434 = vmatpush3.bf16.msra.mxu1 %v1768_v11 }
  0x60   : > { %1410 = vmatpush3.bf16.msra.mxu0 %v1409_v0  ;;  %1436 = vmatprep.subr.bf16.mxu1 %v2141_v5 }
  0x61   : > { %1444 = vmatprep.subr.bf16.mxu0 %v1443_v37 }
  0x63   : > { %655 = vmatmul.mubr.f32.vlgmr.msra.gmra.mrb[2].mxu0 %v2142_v54  ;;  %1438 = vmatpush3.bf16.msra.mxu1 %v2143_v30 }
  0x64   : > { %1446 = vmatpush3.bf16.msra.mxu0 %v1445_v10  ;;  %1440 = vmatprep.subr.bf16.mxu1 %v2144_v51 }
  0x65   : > { %1448 = vmatprep.subr.bf16.mxu0 %v1447_v41  ;;  %929 = vmatprep.mubr.f32.mxu0 %v2145_v3 }
  0x67   : > { %1442 = vmatpush3.bf16.msra.mxu1 %v2146_v6 }
  0x68   : > { %1450 = vmatpush3.bf16.msra.mxu0 %v1449_v18  ;;  %1476 = vmatprep.subr.bf16.mxu1 %v1570_v14  ;;  %v2148_v14 = vand.u32 4294901760, %v1794_v33 }
  0x69   : > { %1452 = vmatprep.subr.bf16.mxu0 %v1451_v47 }
  0x6a   : > { %763 = vmatmul.mubr.f32.vlgmr.msra.gmra.mrb[2].mxu1 %v2147_v13 }
  0x6b   : > { %1478 = vmatpush3.bf16.msra.mxu1 %v1580_v20  ;;  %1033 = vmatprep.mubr.f32.mxu1 %v2145_v3  ;;  %v2149_v20 = vand.u32 4294901760, %v1810_v57 }
  0x6c   : > { %1454 = vmatpush3.bf16.msra.mxu0 %v1453_v7  ;;  %1480 = vmatprep.subr.bf16.mxu1 %v1584_v22  ;;  %v2150_v22 = vand.u32 4294901760, %v1840_v35 }
  0x6d   : > { %1456 = vmatprep.subr.bf16.mxu0 %v1455_v8  ;;  %v1467_v53 = vpack.c.bf16 %v2149_v20, %v2148_v14 }
  0x6f   : > { %1482 = vmatpush3.bf16.msra.mxu1 %v1597_v27  ;;  %v2151_v27 = vand.u32 4294901760, %v1849_v1 }
  0x70   : > { %1458 = vmatpush3.bf16.msra.mxu0 %v1457_v61  ;;  %1484 = vmatprep.subr.bf16.mxu1 %v1614_v39 }
  0x71   : > { %1460 = vmatprep.subr.bf16.mxu0 %v1459_v46  ;;  %v1471_v39 = vpack.c.bf16 %v2151_v27, %v2150_v22 }
  0x73   : > { %1486 = vmatpush3.bf16.msra.mxu1 %v1625_v45  ;;  %v1473_v45 = vpack.c.bf16 %v398_v24, %v391_v52 }
  0x74   : > { %1462 = vmatpush3.bf16.msra.mxu0 %v1461_v2  ;;  %1488 = vmatprep.subr.bf16.mxu1 %v1653_v62 }
  0x75   : > { %1464 = vmatprep.subr.bf16.mxu0 %v1463_v59 }
  0x77   : > { %1490 = vmatpush3.bf16.msra.mxu1 %v1678_v16 }
  0x78   : > { %1466 = vmatpush3.bf16.msra.mxu0 %v1465_v15  ;;  %1492 = vmatprep.subr.bf16.mxu1 %v1696_v49 }
  0x79   : > { %1468 = vmatprep.subr.bf16.mxu0 %v1467_v53 }
  0x7b   : > { %1494 = vmatpush3.bf16.msra.mxu1 %v1720_v4 }
  0x7c   : > { %1470 = vmatpush3.bf16.msra.mxu0 %v1983_v26  ;;  %1496 = vmatprep.subr.bf16.mxu1 %v1744_v48 }
  0x7d   : > { %1472 = vmatprep.subr.bf16.mxu0 %v1471_v39 }
  0x7f   : > { %1498 = vmatpush3.bf16.msra.mxu1 %v1768_v11 }
  0x80   : > { %1474 = vmatpush3.bf16.msra.mxu0 %v1473_v45  ;;  %1500 = vmatprep.subr.bf16.mxu1 %v2141_v5 }
  0x83   : > { %931 = vmatmul.mubr.f32.vlgmr.msra.gmra.mrb[4].mxu0 %v1870_v34  ;;  %1502 = vmatpush3.bf16.msra.mxu1 %v2143_v30 }
  0x84   : > { %1504 = vmatprep.subr.bf16.mxu1 %v2144_v51 }
  0x87   : > { %1506 = vmatpush3.bf16.msra.mxu1 %v2146_v6 }
  0x8a   : > { %1035 = vmatmul.mubr.f32.vlgmr.msra.gmra.mrb[4].mxu1 %v1870_v34 }
 0x116   : > { %v1137_v35 = vpop.f32.mrb[0].mxu0 }
 0x117   : > { %v1138_v62 = vpop.f32.mrb[1].mxu0 }
 0x118   : > { %v1139_v16 = vadd.f32 %v1138_v62, %v1137_v35 }
 0x11d   : > { %v1172_v33 = vpop.f32.mrb[0].mxu1 }
 0x11e   : > { %v1173_v49 = vpop.f32.mrb[1].mxu1 }
 0x11f   : > { %v1174_v4 = vadd.f32 %v1173_v49, %v1172_v33 }
 0x121   : > { %v519_v11 = vadd.f32 %v1174_v4, %v1139_v16 }
 0x136   : > { %v1207_v48 = vpop.f32.mrb[2].mxu0 }
 0x137   : > { %v1208_v57 = vpop.f32.mrb[3].mxu0 }
 0x138   : > { %v1209_v56 = vadd.f32 %v1208_v57, %v1207_v48 }
 0x13a   : > { %v657_v1 = vadd.f32 %v1209_v56, %v519_v11 }
 0x13d   : > { %v1242_v19 = vpop.f32.mrb[2].mxu1 }
 0x13e   : > { %v1243_v52 = vpop.f32.mrb[3].mxu1 }
 0x13f   : > { %v1244_v24 = vadd.f32 %v1243_v52, %v1242_v19 }
 0x141   : > { %v765_v37 = vadd.f32 %v1244_v24, %v657_v1 }
 0x156   : > { %v1277_v10 = vpop.f32.mrb[4].mxu0 }
 0x157   : > { %v1278_v41 = vpop.f32.mrb[5].mxu0 }
 0x158   : > { %v1279_v18 = vadd.f32 %v1278_v41, %v1277_v10 }
 0x15a   : > { %v933_v34 = vadd.f32 %v1279_v18, %v765_v37 }
 0x15d   : > { %v1312_v47 = vpop.f32.mrb[4].mxu1 }
 0x15e   : > { %v1313_v7 = vpop.f32.mrb[5].mxu1 }
 0x15f   : > { %v1314_v8 = vadd.f32 %v1313_v7, %v1312_v47 }
 0x161   : > { %v1037_v28 = vadd.f32 %v1314_v8, %v933_v34 }
 0x163   : > { %1040 = vst [vmem:[%s141_s3] sm:$0xff] %v1037_v28 }
 0x164 PF: > { %s12_s9 = sadd.s32 1, %s1521_s9  }
 0x165   : > { %p9_p4 = scmp.ge.s32.totalorder %s12_s9, 4  }
 0x167   :  { %11 = sbr.rel (!%p9_p4) target bundleno = 1 (0x1), region = 58 }

</bundles_post_ra>
